<compile_context>
chip_gen: v7x
topology: tpu7x:2x2x1
jax: 0.10.0
libtpu: 0.0.40
codegen_flags: <defaults>
</compile_context>

<pallas_src>
import functools

import jax
import jax.numpy as jnp
from jax import lax
from jax.experimental import pallas as pl
from jax.experimental.pallas import tpu as pltpu


# ----------------------------- glue (plain JAX) -----------------------------

def adaptive_avg_pool2d(x, out_h, out_w):
    """Matches torch.nn.functional.adaptive_avg_pool2d for NCHW input."""
    B, C, H, W = x.shape
    if H % out_h == 0 and W % out_w == 0:
        return x.reshape(B, C, out_h, H // out_h, out_w, W // out_w).mean(axis=(3, 5))
    rows = []
    for i in range(out_h):
        h0 = (i * H) // out_h
        h1 = -((-(i + 1) * H) // out_h)  # ceil((i+1)*H/out_h)
        cols = []
        for j in range(out_w):
            w0 = (j * W) // out_w
            w1 = -((-(j + 1) * W) // out_w)
            cols.append(jnp.mean(x[:, :, h0:h1, w0:w1], axis=(2, 3)))
        rows.append(jnp.stack(cols, axis=-1))
    return jnp.stack(rows, axis=-2)  # (B, C, out_h, out_w)


def _round_up(x, m):
    return ((x + m - 1) // m) * m


def _largest_tile(total, cap):
    """Largest multiple of 128 dividing `total` and <= cap (assumes total%128==0)."""
    cap = max(128, min(cap, total))
    cap -= cap % 128
    for t in range(cap, 127, -128):
        if total % t == 0:
            return t
    return 128


def _vmem_capacity_bytes():
    """Per-TensorCore VMEM; conservative 64 MiB if the query is unavailable."""
    try:
        return int(pltpu.get_tpu_info().vmem_capacity_bytes)
    except Exception:
        pass
    try:
        kind = jax.devices()[0].device_kind.lower()
        if ("v5" in kind) or ("v6" in kind):
            return 128 * 1024 * 1024
    except Exception:
        pass
    return 64 * 1024 * 1024


# ------------------------------ kernel helpers -------------------------------

def _affinity(sp_aug, pix_aug, sy, sx, ly, lx):
    """Masked softmax affinity of one pixel tile to a candidate superpixel set.

    sp_aug : (C+1, NS)  rows = [2*sp ; -|sp|^2]
    pix_aug: (C+1, TP)  rows = [pix  ; ones]
    sy, sx : (NS, 1)    candidate superpixel lattice coords (f32 integers)
    ly, lx : (1, TP)    pixel lattice coords (f32 integers; -10 marks padding)
    Returns aff: (NS, TP), zero outside each pixel's 3x3 lattice neighborhood
    and zero for padded pixel columns.
    """
    # neg = 2*<sp,pix> - |sp|^2 (pix_sq is constant per column -> cancels in
    # the softmax over superpixels). The -|sp|^2 term rides the MXU matmul
    # via the ones row of pix_aug; K = C+1 so this is essentially free.
    neg = lax.dot_general(sp_aug, pix_aug, (((0,), (0,)), ((), ())),
                          preferred_element_type=jnp.float32)         # (NS, TP)
    mask = (jnp.abs(sy - ly) <= 1.0) & (jnp.abs(sx - lx) <= 1.0)      # (NS, TP)
    # Single-select masked softmax: invalid entries get -1e30 and underflow to
    # exactly 0 after exp (== the dense scatter of the masked sparse_coo_tensor
    # in the PyTorch reference, where invalid dist = 1e16).
    masked = jnp.where(mask, neg, jnp.float32(-1e30))
    m = jnp.max(masked, axis=0, keepdims=True)                        # (1, TP)
    e = jnp.exp(masked - m)
    denom = jnp.sum(e, axis=0, keepdims=True)                         # >= 1
    r = pl.reciprocal(denom, approx=True)
    r = r * (2.0 - denom * r)          # one Newton step -> ~f32-exact col sums
    valid = (ly >= 0.0).astype(jnp.float32)       # zero padded pixel columns
    return e * (r * valid)


# ------------------------------ pallas kernels --------------------------------

def _make_centroid_update(B, C, S, SLAB, G, T, TP, vmem_limit):
    """Non-final iteration: per-group partial centroid sums (no dense HBM write).

    out[b, g, :C, :] = sum_p aff[s, p] * pix[c, p]   (numerator slab)
    out[b, g,  C, :] = sum_p aff[s, p]               (denominator slab)
    The tiny (B, G, C+1, SLAB) partials are combined & normalized in JAX.
    """

    def kernel(coords_ref, pix_ref, sp_ref, sc_ref, out_ref):
        t = pl.program_id(2)
        pix = pix_ref[0]                       # (C+1, TP)  rows: pix, ones
        sp = sp_ref[0, 0]                      # (C+1, SLAB) rows: 2*sp, -|sp|^2
        sy = sc_ref[0, :, 0:1]                 # (SLAB, 1)
        sx = sc_ref[0, :, 1:2]
        ly = coords_ref[0:1, :]                # (1, TP)
        lx = coords_ref[1:2, :]

        aff = _affinity(sp, pix, sy, sx, ly, lx)                       # (SLAB, TP)
        # One MXU matmul gives both numerator (rows 0..C-1) and sum (row C).
        part = lax.dot_general(pix, aff, (((1,), (1,)), ((), ())),
                               preferred_element_type=jnp.float32)     # (C+1, SLAB)

        @pl.when(t == 0)
        def _init():
            out_ref[0, 0] = part

        @pl.when(t != 0)
        def _accum():
            out_ref[0, 0] = out_ref[0, 0] + part

    return pl.pallas_call(
        kernel,
        out_shape=jax.ShapeDtypeStruct((B, G, C + 1, SLAB), jnp.float32),
        grid_spec=pltpu.PrefetchScalarGridSpec(
            num_scalar_prefetch=0,
            grid=(B, G, T),
            in_specs=[
                pl.BlockSpec((2, TP), lambda b, g, t: (0, g * T + t)),            # ly/lx
                pl.BlockSpec((1, C + 1, TP), lambda b, g, t: (b, 0, g * T + t)),  # pix_aug
                pl.BlockSpec((1, 1, C + 1, SLAB), lambda b, g, t: (b, g, 0, 0)),  # sp slab
                pl.BlockSpec((1, SLAB, 2), lambda b, g, t: (g, 0, 0)),            # sy/sx slab
            ],
            out_specs=pl.BlockSpec((1, 1, C + 1, SLAB), lambda b, g, t: (b, g, 0, 0)),
        ),
        compiler_params=pltpu.CompilerParams(
            dimension_semantics=("parallel", "parallel", "arbitrary"),
            vmem_limit_bytes=vmem_limit),
    )


def _make_final_affinity(B, C, S, P_pad, TP, vmem_limit, out_dtype):
    """Final iteration: dense soft association only (no centroid update)."""
    J = P_pad // TP

    def kernel(coords_ref, sc_ref, pix_ref, sp_ref, aff_ref):
        aff = _affinity(sp_ref[0], pix_ref[0],
                        sc_ref[:, 0:1], sc_ref[:, 1:2],
                        coords_ref[0:1, :], coords_ref[1:2, :])        # (S, TP)
        aff_ref[0] = aff.astype(out_dtype)

    return pl.pallas_call(
        kernel,
        out_shape=jax.ShapeDtypeStruct((B, S, P_pad), out_dtype),
        grid_spec=pltpu.PrefetchScalarGridSpec(
            num_scalar_prefetch=0,
            grid=(B, J),
            in_specs=[
                pl.BlockSpec((2, TP), lambda b, j: (0, j)),                 # ly/lx
                pl.BlockSpec((S, 2), lambda b, j: (0, 0)),                  # sy/sx
                pl.BlockSpec((1, C + 1, TP), lambda b, j: (b, 0, j)),       # pix_aug
                pl.BlockSpec((1, C + 1, S), lambda b, j: (b, 0, 0)),        # sp_aug
            ],
            out_specs=pl.BlockSpec((1, S, TP), lambda b, j: (b, 0, j)),
        ),
        compiler_params=pltpu.CompilerParams(
            dimension_semantics=("parallel", "parallel"),
            vmem_limit_bytes=vmem_limit),
    )


# ------------------------------- GenSP forward ------------------------------

@functools.partial(jax.jit, static_argnums=(1, 2, 3))
def gen_sp_forward(x, stoken_size, n_iter=2, out_dtype=jnp.float32):
    """x: (B, C, H, W) float32. Returns soft association (B, S, H*W); S static."""
    x = x.astype(jnp.float32)
    B, C, H, W = x.shape
    sh, sw = stoken_size
    nh, nw = H // sh, W // sw
    S = nh * nw
    P = H * W
    P_pad = _round_up(P, 128)

    # ---------------- static, chip-aware tiling decisions -------------------
    vmem_cap = _vmem_capacity_bytes()
    vmem_limit = (vmem_cap * 3) // 4           # leave compiler headroom
    budget = vmem_limit // 2                   # budget for live per-tile data

    rpg = H // nh                              # image rows per lattice row
    fast = (H % nh == 0) and ((rpg * W) % 128 == 0) and (P_pad == P)
    if fast:
        G, group_P = nh, rpg * W               # one pixel group per lattice row
    else:
        G, group_P = 1, P_pad                  # padded fallback: one big group
    if fast and nh >= 3:
        SLAB = 3 * nw                          # candidate slab: 3 lattice rows
        starts = [min(max(g - 1, 0), nh - 3) * nw for g in range(G)]
    else:
        SLAB = S
        starts = [0] * G

    bpl_c = 4 * (8 * SLAB + 3 * (C + 1) + 8)   # ~bytes per pixel-lane, centroid
    TP_c = _largest_tile(group_P, min(max(budget // bpl_c, 128), 8192))
    T = group_P // TP_c
    bpl_f = 4 * (8 * S + 3 * (C + 1) + 8)      # ~bytes per pixel-lane, final
    TP_f = _largest_tile(P_pad, min(max(budget // bpl_f, 128), 16384))

    # ---------------------- wrapper-side preprocessing ----------------------
    pix = x.reshape(B, C, P)
    pix_aug = jnp.concatenate([pix, jnp.ones((B, 1, P), jnp.float32)], axis=1)
    if P_pad != P:
        pix_aug = jnp.pad(pix_aug, ((0, 0), (0, 0), (0, P_pad - P)))

    ly = jnp.repeat((jnp.arange(H) * nh) // H, W)
    lx = jnp.tile((jnp.arange(W) * nw) // W, H)
    coords = jnp.stack([ly, lx], axis=0).astype(jnp.float32)           # (2, P)
    if P_pad != P:
        coords = jnp.pad(coords, ((0, 0), (0, P_pad - P)), constant_values=-10.0)

    sidx = jnp.arange(S)
    scoord = jnp.stack([sidx // nw, sidx % nw], axis=1).astype(jnp.float32)   # (S, 2)
    scoord_slab = jnp.stack([scoord[s0:s0 + SLAB] for s0 in starts], axis=0)  # (G, SLAB, 2)

    def augment(sp):   # (B, C, S) -> (B, C+1, S): rows [2*sp ; -|sp|^2]
        return jnp.concatenate(
            [2.0 * sp, -jnp.sum(sp * sp, axis=1, keepdims=True)], axis=1)

    sp = adaptive_avg_pool2d(x, nh, nw).reshape(B, C, S)

    # ---------------- non-final iterations: centroid updates ----------------
    if n_iter > 1:
        centroid_update = _make_centroid_update(B, C, S, SLAB, G, T, TP_c, vmem_limit)
        for _ in range(n_iter - 1):
            sp_aug = augment(sp)                                        # (B, C+1, S)
            sp_slab = jnp.stack([sp_aug[:, :, s0:s0 + SLAB] for s0 in starts], axis=1)
            part = centroid_update(coords, pix_aug, sp_slab, scoord_slab)
            acc = jnp.zeros((B, C + 1, S), jnp.float32)
            for g, s0 in enumerate(starts):
                acc = acc.at[:, :, s0:s0 + SLAB].add(part[:, g])
            sp = acc[:, :C, :] / (acc[:, C:, :] + 1e-16)

    # -------------------- final iteration: dense affinity -------------------
    aff = _make_final_affinity(B, C, S, P_pad, TP_f, vmem_limit, out_dtype)(
        coords, scoord, pix_aug, augment(sp))
    if P_pad != P:
        aff = aff[:, :, :P]
    return aff


# --------------------------- pure-JAX reference ------------------------------

def _reference_forward(x, stoken_size, n_iter=2):
    """Dense re-implementation of ssn_iter (for correctness checking only)."""
    x = x.astype(jnp.float32)
    B, C, H, W = x.shape
    sh, sw = stoken_size
    nh, nw = H // sh, W // sw
    S, P = nh * nw, H * W
    pix = x.reshape(B, C, P)
    sp = adaptive_avg_pool2d(x, nh, nw).reshape(B, C, S)

    yy = (jnp.arange(H) * nh) // H
    xx = (jnp.arange(W) * nw) // W
    ly = jnp.broadcast_to(yy[:, None], (H, W)).reshape(P)
    lx = jnp.broadcast_to(xx[None, :], (H, W)).reshape(P)
    sy = jnp.arange(S) // nw
    sx = jnp.arange(S) % nw
    mask = ((jnp.abs(sy[:, None] - ly[None, :]) <= 1) &
            (jnp.abs(sx[:, None] - lx[None, :]) <= 1))                 # (S, P)

    def affinity(sp):
        d = (jnp.sum(pix * pix, axis=1)[:, None, :]
             + jnp.sum(sp * sp, axis=1)[:, :, None]
             - 2.0 * jnp.einsum("bcs,bcp->bsp", sp, pix))
        neg = jnp.where(mask[None], -d, -jnp.inf)
        a = jax.nn.softmax(neg, axis=1)
        return jnp.where(mask[None], a, 0.0)

    for _ in range(n_iter - 1):
        a = affinity(sp)
        num = jnp.einsum("bsp,bcp->bcs", a, pix)
        ssum = jnp.sum(a, axis=2)[:, None, :]
        sp = num / (ssum + 1e-16)
    return affinity(sp)


# ----------------------------------- main ------------------------------------

if __name__ == "__main__":
    key = jax.random.PRNGKey(0)
    cases = [
        # (B, C, H, W, stoken)       exercised kernel path
        (2, 4, 16, 16, (8, 8)),      # SLAB == S (nh < 3), lattice-row groups
        (2, 4, 32, 32, (8, 8)),      # candidate-slab path (SLAB = 12 < S = 16)
        (2, 4, 16, 12, (8, 4)),      # H*W not 128-divisible -> padded fallback
    ]
    for idx, (B, C, H, W, st) in enumerate(cases):
        key, sub = jax.random.split(key)
        x = jax.random.normal(sub, (B, C, H, W), dtype=jnp.float32)
        num_spixels = (H // st[0]) * (W // st[1])

        soft_assoc = gen_sp_forward(x, st, 2, jnp.float32)
        soft_assoc = jax.block_until_ready(soft_assoc)

        assert soft_assoc.shape == (B, num_spixels, H * W), (idx, soft_assoc.shape)
        col_sums = jnp.sum(soft_assoc, axis=1)
        assert bool(jnp.all(jnp.abs(col_sums - 1.0) < 1e-4)), \
            f"case {idx}: affinity columns must sum to 1"

        ref = _reference_forward(x, st, 2)
        err = float(jnp.max(jnp.abs(soft_assoc - ref)))
        assert err < 2e-3, f"case {idx}: mismatch vs dense reference (max err {err})"

    print("KERNEL_OK")
</pallas_src>

<mosaic_0001>
module attributes {stable_mosaic.version = 11 : i64} {
  func.func @kernel(%arg0: i32, %arg1: i32, %arg2: memref<2x256xf32, #tpu.memory_space<vmem>>, %arg3: memref<4x2xf32, #tpu.memory_space<vmem>>, %arg4: memref<1x5x256xf32, #tpu.memory_space<vmem>>, %arg5: memref<1x5x4xf32, #tpu.memory_space<vmem>>, %arg6: memref<1x4x256xf32, #tpu.memory_space<vmem>>) attributes {dimension_semantics = [#tpu.dimension_semantics<parallel>, #tpu.dimension_semantics<parallel>], iteration_bounds = array<i64: 2, 1>, scalar_prefetch = 0 : i64, scratch_operands = 0 : i64, tpu.core_type = #tpu.core_type<tc>, window_params = [{transform_indices = @transform_0, window_bounds = array<i64: 2, 256>}, {pipeline_mode = #tpu.pipeline_mode<synchronous>, transform_indices = @transform_1, window_bounds = array<i64: 4, 2>}, {transform_indices = @transform_2, window_bounds = array<i64: 1, 5, 256>}, {transform_indices = @transform_3, window_bounds = array<i64: 1, 5, 4>}, {transform_indices = @transform_4, window_bounds = array<i64: 1, 4, 256>}]} {
    %c0 = arith.constant 0 : index
    %c0_0 = arith.constant 0 : index
    %c0_1 = arith.constant 0 : index
    %0 = vector.load %arg5[%c0, %c0_0, %c0_1] : memref<1x5x4xf32, #tpu.memory_space<vmem>>, vector<1x5x4xf32>
    %1 = vector.shape_cast %0 : vector<1x5x4xf32> to vector<5x4xf32>
    %c0_2 = arith.constant 0 : index
    %c0_3 = arith.constant 0 : index
    %c0_4 = arith.constant 0 : index
    %2 = vector.load %arg4[%c0_2, %c0_3, %c0_4] : memref<1x5x256xf32, #tpu.memory_space<vmem>>, vector<1x5x256xf32>
    %3 = vector.shape_cast %2 : vector<1x5x256xf32> to vector<5x256xf32>
    %c0_5 = arith.constant 0 : index
    %c0_6 = arith.constant 0 : index
    %4 = vector.load %arg3[%c0_5, %c0_6] : memref<4x2xf32, #tpu.memory_space<vmem>>, vector<4x1xf32>
    %c0_7 = arith.constant 0 : index
    %c1 = arith.constant 1 : index
    %5 = vector.load %arg3[%c0_7, %c1] : memref<4x2xf32, #tpu.memory_space<vmem>>, vector<4x1xf32>
    %c0_8 = arith.constant 0 : index
    %c0_9 = arith.constant 0 : index
    %6 = vector.load %arg2[%c0_8, %c0_9] : memref<2x256xf32, #tpu.memory_space<vmem>>, vector<1x256xf32>
    %c1_10 = arith.constant 1 : index
    %c0_11 = arith.constant 0 : index
    %7 = vector.load %arg2[%c1_10, %c0_11] : memref<2x256xf32, #tpu.memory_space<vmem>>, vector<1x256xf32>
    %cst = arith.constant dense<0.000000e+00> : vector<4x256xf32>
    %8 = tpu.matmul %1, %3, %cst {dimension_numbers = #tpu.dot_dimension_numbers<[0], [0], [1], [1], [0, 1, 1, 1], [], []>} : vector<5x4xf32>, vector<5x256xf32>, vector<4x256xf32> -> vector<4x256xf32>
    %9 = vector.broadcast %4 : vector<4x1xf32> to vector<4x256xf32>
    %10 = vector.broadcast %6 : vector<1x256xf32> to vector<4x256xf32>
    %11 = arith.subf %9, %10 : vector<4x256xf32>
    %12 = math.absf %11 : vector<4x256xf32>
    %cst_12 = arith.constant 1.000000e+00 : f32
    %13 = vector.broadcast %cst_12 : f32 to vector<4x256xf32>
    %14 = arith.cmpf ole, %12, %13 : vector<4x256xf32>
    %15 = vector.broadcast %5 : vector<4x1xf32> to vector<4x256xf32>
    %16 = vector.broadcast %7 : vector<1x256xf32> to vector<4x256xf32>
    %17 = arith.subf %15, %16 : vector<4x256xf32>
    %18 = math.absf %17 : vector<4x256xf32>
    %cst_13 = arith.constant 1.000000e+00 : f32
    %19 = vector.broadcast %cst_13 : f32 to vector<4x256xf32>
    %20 = arith.cmpf ole, %18, %19 : vector<4x256xf32>
    %21 = arith.andi %14, %20 : vector<4x256xi1>
    %cst_14 = arith.constant -1.000000e+30 : f32
    %22 = vector.broadcast %cst_14 : f32 to vector<4x256xf32>
    %23 = arith.select %21, %8, %22 : vector<4x256xi1>, vector<4x256xf32>
    %cst_15 = arith.constant dense<0xFF800000> : vector<256xf32>
    %24 = vector.multi_reduction <maximumf>, %23, %cst_15 [0] : vector<4x256xf32> to vector<256xf32>
    %25 = vector.shape_cast %24 : vector<256xf32> to vector<1x256xf32>
    %26 = vector.broadcast %25 : vector<1x256xf32> to vector<4x256xf32>
    %27 = arith.subf %23, %26 : vector<4x256xf32>
    %28 = math.exp %27 : vector<4x256xf32>
    %cst_16 = arith.constant dense<0.000000e+00> : vector<256xf32>
    %29 = vector.multi_reduction <add>, %28, %cst_16 [0] : vector<4x256xf32> to vector<256xf32>
    %30 = vector.shape_cast %29 : vector<256xf32> to vector<1x256xf32>
    %31 = tpu.reciprocal %30 {approx = true} : vector<1x256xf32> -> vector<1x256xf32>
    %32 = arith.mulf %30, %31 : vector<1x256xf32>
    %cst_17 = arith.constant 2.000000e+00 : f32
    %33 = vector.broadcast %cst_17 : f32 to vector<1x256xf32>
    %34 = arith.subf %33, %32 : vector<1x256xf32>
    %35 = arith.mulf %31, %34 : vector<1x256xf32>
    %cst_18 = arith.constant 0.000000e+00 : f32
    %36 = vector.broadcast %cst_18 : f32 to vector<1x256xf32>
    %37 = arith.cmpf oge, %6, %36 : vector<1x256xf32>
    %38 = arith.extui %37 : vector<1x256xi1> to vector<1x256xi32>
    %39 = arith.sitofp %38 : vector<1x256xi32> to vector<1x256xf32>
    %40 = arith.mulf %35, %39 : vector<1x256xf32>
    %41 = vector.broadcast %40 : vector<1x256xf32> to vector<4x256xf32>
    %42 = arith.mulf %28, %41 : vector<4x256xf32>
    %c0_19 = arith.constant 0 : index
    %c0_20 = arith.constant 0 : index
    %c0_21 = arith.constant 0 : index
    %43 = vector.load %arg6[%c0_19, %c0_20, %c0_21] : memref<1x4x256xf32, #tpu.memory_space<vmem>>, vector<1x4x256xf32>
    %44 = vector.shape_cast %43 : vector<1x4x256xf32> to vector<4x256xf32>
    %45 = vector.shape_cast %42 : vector<4x256xf32> to vector<1x4x256xf32>
    tpu.vector_store %arg6[%c0_19, %c0_20, %c0_21], %45 {strides = array<i32>} : memref<1x4x256xf32, #tpu.memory_space<vmem>>, vector<1x4x256xf32>,
    return
  }
  func.func @transform_0(%arg0: i32, %arg1: i32) -> (i32, i32) {
    %c0_i32 = arith.constant 0 : i32
    %c0_i32_0 = arith.constant 0 : i32
    return %c0_i32, %arg1 : i32, i32
  }
  func.func @transform_1(%arg0: i32, %arg1: i32) -> (i32, i32) {
    %c0_i32 = arith.constant 0 : i32
    %c0_i32_0 = arith.constant 0 : i32
    %c0_i32_1 = arith.constant 0 : i32
    return %c0_i32, %c0_i32_0 : i32, i32
  }
  func.func @transform_2(%arg0: i32, %arg1: i32) -> (i32, i32, i32) {
    %c0_i32 = arith.constant 0 : i32
    %c0_i32_0 = arith.constant 0 : i32
    return %arg0, %c0_i32, %arg1 : i32, i32, i32
  }
  func.func @transform_3(%arg0: i32, %arg1: i32) -> (i32, i32, i32) {
    %c0_i32 = arith.constant 0 : i32
    %c0_i32_0 = arith.constant 0 : i32
    %c0_i32_1 = arith.constant 0 : i32
    return %arg0, %c0_i32, %c0_i32_0 : i32, i32, i32
  }
  func.func @transform_4(%arg0: i32, %arg1: i32) -> (i32, i32, i32) {
    %c0_i32 = arith.constant 0 : i32
    %c0_i32_0 = arith.constant 0 : i32
    return %arg0, %c0_i32, %arg1 : i32, i32, i32
  }
}

module attributes {stable_mosaic.version = 11 : i64} {
  func.func @kernel(%arg0: i32, %arg1: i32, %arg2: i32, %arg3: memref<2x128xf32, #tpu.memory_space<vmem>>, %arg4: memref<1x5x128xf32, #tpu.memory_space<vmem>>, %arg5: memref<1x1x5x4xf32, #tpu.memory_space<vmem>>, %arg6: memref<1x4x2xf32, #tpu.memory_space<vmem>>, %arg7: memref<1x1x5x4xf32, #tpu.memory_space<vmem>>) attributes {dimension_semantics = [#tpu.dimension_semantics<parallel>, #tpu.dimension_semantics<parallel>, #tpu.dimension_semantics<arbitrary>], iteration_bounds = array<i64: 2, 2, 1>, scalar_prefetch = 0 : i64, scratch_operands = 0 : i64, tpu.core_type = #tpu.core_type<tc>, window_params = [{transform_indices = @transform_0, window_bounds = array<i64: 2, 128>}, {transform_indices = @transform_1, window_bounds = array<i64: 1, 5, 128>}, {transform_indices = @transform_2, window_bounds = array<i64: 1, 1, 5, 4>}, {transform_indices = @transform_3, window_bounds = array<i64: 1, 4, 2>}, {transform_indices = @transform_4, window_bounds = array<i64: 1, 1, 5, 4>}]} {
    %c0 = arith.constant 0 : index
    %c0_0 = arith.constant 0 : index
    %c0_1 = arith.constant 0 : index
    %0 = vector.load %arg4[%c0, %c0_0, %c0_1] : memref<1x5x128xf32, #tpu.memory_space<vmem>>, vector<1x5x128xf32>
    %1 = vector.shape_cast %0 : vector<1x5x128xf32> to vector<5x128xf32>
    %c0_2 = arith.constant 0 : index
    %c0_3 = arith.constant 0 : index
    %c0_4 = arith.constant 0 : index
    %c0_5 = arith.constant 0 : index
    %2 = vector.load %arg5[%c0_2, %c0_3, %c0_4, %c0_5] : memref<1x1x5x4xf32, #tpu.memory_space<vmem>>, vector<1x1x5x4xf32>
    %3 = vector.shape_cast %2 : vector<1x1x5x4xf32> to vector<5x4xf32>
    %c0_6 = arith.constant 0 : index
    %c0_7 = arith.constant 0 : index
    %c0_8 = arith.constant 0 : index
    %4 = vector.load %arg6[%c0_6, %c0_7, %c0_8] : memref<1x4x2xf32, #tpu.memory_space<vmem>>, vector<1x4x1xf32>
    %5 = vector.shape_cast %4 : vector<1x4x1xf32> to vector<4x1xf32>
    %c0_9 = arith.constant 0 : index
    %c0_10 = arith.constant 0 : index
    %c1 = arith.constant 1 : index
    %6 = vector.load %arg6[%c0_9, %c0_10, %c1] : memref<1x4x2xf32, #tpu.memory_space<vmem>>, vector<1x4x1xf32>
    %7 = vector.shape_cast %6 : vector<1x4x1xf32> to vector<4x1xf32>
    %c0_11 = arith.constant 0 : index
    %c0_12 = arith.constant 0 : index
    %8 = vector.load %arg3[%c0_11, %c0_12] : memref<2x128xf32, #tpu.memory_space<vmem>>, vector<1x128xf32>
    %c1_13 = arith.constant 1 : index
    %c0_14 = arith.constant 0 : index
    %9 = vector.load %arg3[%c1_13, %c0_14] : memref<2x128xf32, #tpu.memory_space<vmem>>, vector<1x128xf32>
    %cst = arith.constant dense<0.000000e+00> : vector<4x128xf32>
    %10 = tpu.matmul %3, %1, %cst {dimension_numbers = #tpu.dot_dimension_numbers<[0], [0], [1], [1], [0, 1, 1, 1], [], []>} : vector<5x4xf32>, vector<5x128xf32>, vector<4x128xf32> -> vector<4x128xf32>
    %11 = vector.broadcast %5 : vector<4x1xf32> to vector<4x128xf32>
    %12 = vector.broadcast %8 : vector<1x128xf32> to vector<4x128xf32>
    %13 = arith.subf %11, %12 : vector<4x128xf32>
    %14 = math.absf %13 : vector<4x128xf32>
    %cst_15 = arith.constant 1.000000e+00 : f32
    %15 = vector.broadcast %cst_15 : f32 to vector<4x128xf32>
    %16 = arith.cmpf ole, %14, %15 : vector<4x128xf32>
    %17 = vector.broadcast %7 : vector<4x1xf32> to vector<4x128xf32>
    %18 = vector.broadcast %9 : vector<1x128xf32> to vector<4x128xf32>
    %19 = arith.subf %17, %18 : vector<4x128xf32>
    %20 = math.absf %19 : vector<4x128xf32>
    %cst_16 = arith.constant 1.000000e+00 : f32
    %21 = vector.broadcast %cst_16 : f32 to vector<4x128xf32>
    %22 = arith.cmpf ole, %20, %21 : vector<4x128xf32>
    %23 = arith.andi %16, %22 : vector<4x128xi1>
    %cst_17 = arith.constant -1.000000e+30 : f32
    %24 = vector.broadcast %cst_17 : f32 to vector<4x128xf32>
    %25 = arith.select %23, %10, %24 : vector<4x128xi1>, vector<4x128xf32>
    %cst_18 = arith.constant dense<0xFF800000> : vector<128xf32>
    %26 = vector.multi_reduction <maximumf>, %25, %cst_18 [0] : vector<4x128xf32> to vector<128xf32>
    %27 = vector.shape_cast %26 : vector<128xf32> to vector<1x128xf32>
    %28 = vector.broadcast %27 : vector<1x128xf32> to vector<4x128xf32>
    %29 = arith.subf %25, %28 : vector<4x128xf32>
    %30 = math.exp %29 : vector<4x128xf32>
    %cst_19 = arith.constant dense<0.000000e+00> : vector<128xf32>
    %31 = vector.multi_reduction <add>, %30, %cst_19 [0] : vector<4x128xf32> to vector<128xf32>
    %32 = vector.shape_cast %31 : vector<128xf32> to vector<1x128xf32>
    %33 = tpu.reciprocal %32 {approx = true} : vector<1x128xf32> -> vector<1x128xf32>
    %34 = arith.mulf %32, %33 : vector<1x128xf32>
    %cst_20 = arith.constant 2.000000e+00 : f32
    %35 = vector.broadcast %cst_20 : f32 to vector<1x128xf32>
    %36 = arith.subf %35, %34 : vector<1x128xf32>
    %37 = arith.mulf %33, %36 : vector<1x128xf32>
    %cst_21 = arith.constant 0.000000e+00 : f32
    %38 = vector.broadcast %cst_21 : f32 to vector<1x128xf32>
    %39 = arith.cmpf oge, %8, %38 : vector<1x128xf32>
    %40 = arith.extui %39 : vector<1x128xi1> to vector<1x128xi32>
    %41 = arith.sitofp %40 : vector<1x128xi32> to vector<1x128xf32>
    %42 = arith.mulf %37, %41 : vector<1x128xf32>
    %43 = vector.broadcast %42 : vector<1x128xf32> to vector<4x128xf32>
    %44 = arith.mulf %30, %43 : vector<4x128xf32>
    %cst_22 = arith.constant dense<0.000000e+00> : vector<5x4xf32>
    %45 = tpu.matmul %1, %44, %cst_22 {dimension_numbers = #tpu.dot_dimension_numbers<[1], [1], [0], [0], [0, 0, 1, 0], [], []>} : vector<5x128xf32>, vector<4x128xf32>, vector<5x4xf32> -> vector<5x4xf32>
    %c0_i32 = arith.constant 0 : i32
    %46 = arith.cmpi eq, %arg2, %c0_i32 : i32
    %47 = arith.extui %46 : i1 to i32
    %c0_i32_23 = arith.constant 0 : i32
    %48 = arith.cmpi ne, %47, %c0_i32_23 : i32
    scf.if %48 {
      %c0_26 = arith.constant 0 : index
      %c0_27 = arith.constant 0 : index
      %c0_28 = arith.constant 0 : index
      %c0_29 = arith.constant 0 : index
      %52 = vector.load %arg7[%c0_26, %c0_27, %c0_28, %c0_29] : memref<1x1x5x4xf32, #tpu.memory_space<vmem>>, vector<1x1x5x4xf32>
      %53 = vector.shape_cast %52 : vector<1x1x5x4xf32> to vector<5x4xf32>
      %54 = vector.shape_cast %45 : vector<5x4xf32> to vector<1x1x5x4xf32>
      tpu.vector_store %arg7[%c0_26, %c0_27, %c0_28, %c0_29], %54 {strides = array<i32>} : memref<1x1x5x4xf32, #tpu.memory_space<vmem>>, vector<1x1x5x4xf32>,
    } else {
    }
    %c0_i32_24 = arith.constant 0 : i32
    %49 = arith.cmpi ne, %arg2, %c0_i32_24 : i32
    %50 = arith.extui %49 : i1 to i32
    %c0_i32_25 = arith.constant 0 : i32
    %51 = arith.cmpi ne, %50, %c0_i32_25 : i32
    scf.if %51 {
      %c0_26 = arith.constant 0 : index
      %c0_27 = arith.constant 0 : index
      %c0_28 = arith.constant 0 : index
      %c0_29 = arith.constant 0 : index
      %52 = vector.load %arg7[%c0_26, %c0_27, %c0_28, %c0_29] : memref<1x1x5x4xf32, #tpu.memory_space<vmem>>, vector<1x1x5x4xf32>
      %53 = vector.shape_cast %52 : vector<1x1x5x4xf32> to vector<5x4xf32>
      %54 = arith.addf %53, %45 : vector<5x4xf32>
      %c0_30 = arith.constant 0 : index
      %c0_31 = arith.constant 0 : index
      %c0_32 = arith.constant 0 : index
      %c0_33 = arith.constant 0 : index
      %55 = vector.load %arg7[%c0_30, %c0_31, %c0_32, %c0_33] : memref<1x1x5x4xf32, #tpu.memory_space<vmem>>, vector<1x1x5x4xf32>
      %56 = vector.shape_cast %55 : vector<1x1x5x4xf32> to vector<5x4xf32>
      %57 = vector.shape_cast %54 : vector<5x4xf32> to vector<1x1x5x4xf32>
      tpu.vector_store %arg7[%c0_30, %c0_31, %c0_32, %c0_33], %57 {strides = array<i32>} : memref<1x1x5x4xf32, #tpu.memory_space<vmem>>, vector<1x1x5x4xf32>,
    } else {
    }
    return
  }
  func.func @transform_0(%arg0: i32, %arg1: i32, %arg2: i32) -> (i32, i32) {
    %c1_i32 = arith.constant 1 : i32
    %0 = arith.muli %arg1, %c1_i32 : i32
    %1 = arith.addi %0, %arg2 : i32
    %c0_i32 = arith.constant 0 : i32
    %c0_i32_0 = arith.constant 0 : i32
    return %c0_i32, %1 : i32, i32
  }
  func.func @transform_1(%arg0: i32, %arg1: i32, %arg2: i32) -> (i32, i32, i32) {
    %c1_i32 = arith.constant 1 : i32
    %0 = arith.muli %arg1, %c1_i32 : i32
    %1 = arith.addi %0, %arg2 : i32
    %c0_i32 = arith.constant 0 : i32
    %c0_i32_0 = arith.constant 0 : i32
    return %arg0, %c0_i32, %1 : i32, i32, i32
  }
  func.func @transform_2(%arg0: i32, %arg1: i32, %arg2: i32) -> (i32, i32, i32, i32) {
    %c0_i32 = arith.constant 0 : i32
    %c0_i32_0 = arith.constant 0 : i32
    %c0_i32_1 = arith.constant 0 : i32
    return %arg0, %arg1, %c0_i32, %c0_i32_0 : i32, i32, i32, i32
  }
  func.func @transform_3(%arg0: i32, %arg1: i32, %arg2: i32) -> (i32, i32, i32) {
    %c0_i32 = arith.constant 0 : i32
    %c0_i32_0 = arith.constant 0 : i32
    %c0_i32_1 = arith.constant 0 : i32
    return %arg1, %c0_i32, %c0_i32_0 : i32, i32, i32
  }
  func.func @transform_4(%arg0: i32, %arg1: i32, %arg2: i32) -> (i32, i32, i32, i32) {
    %c0_i32 = arith.constant 0 : i32
    %c0_i32_0 = arith.constant 0 : i32
    %c0_i32_1 = arith.constant 0 : i32
    return %arg0, %arg1, %c0_i32, %c0_i32_0 : i32, i32, i32, i32
  }
}

</mosaic_0001>

<bundles_post_ra>
// kernel: tile.8
= control target key start
LH: loop header
LB: loop body
LE: loop exit
PB: predicated region body
PF: predicated region fallthrough
CT: control target
= control target key end

     0   :  { %s28_s0 = inlined_call_operand.vmem [shape: s32[16], index: 0, kind: input, shape index: {}]   ;;  %s29_s1 = inlined_call_operand.vmem [shape: s32[16,16], index: 1, kind: output, shape index: {}]  }
   0x1   :  { %v4_v0 = vld [vmem:[%s28_s0] ss:$0 sm:$0xff] }
   0x2   :  { %5 = vst [vmem:[%s29_s1] sm:$0xff] %v4_v0  ;;  %8 = vst [vmem:[%s29_s1 + $0x8] sm:$0xff] %v4_v0 }

// kernel: neg.18
= control target key start
LH: loop header
LB: loop body
LE: loop exit
PB: predicated region body
PF: predicated region fallthrough
CT: control target
= control target key end

     0   :  { %s40_s0 = inlined_call_operand.vmem [shape: f32[2,2,2], index: 0, kind: input, shape index: {}]   ;;  %s41_s1 = inlined_call_operand.vmem [shape: f32[2,2,2], index: 1, kind: output, shape index: {}]  }
   0x1   :  { %v2_v0 = vld [vmem:[%s40_s0] sm:$0x3]  ;;  %v16_v1 = vld [vmem:[%s40_s0 + $0x2] sm:$0x3] }
   0x2   :  { %v5_v2 = vxor.u32 2147483648, %v2_v0  ;;  %v12_v3 = vxor.u32 2147483648, %v16_v1 }
   0x4   :  { %7 = vst [vmem:[%s41_s1] sm:$0x3] %v5_v2  ;;  %17 = vst [vmem:[%s41_s1 + $0x2] sm:$0x3] %v12_v3 }

// kernel: neg.19
= control target key start
LH: loop header
LB: loop body
LE: loop exit
PB: predicated region body
PF: predicated region fallthrough
CT: control target
= control target key end

     0   :  { %s24_s0 = inlined_call_operand.vmem [shape: f32[2,4], index: 0, kind: input, shape index: {}]   ;;  %s25_s1 = inlined_call_operand.vmem [shape: f32[2,4], index: 1, kind: output, shape index: {}]  }
   0x1   :  { %v2_v0 = vld [vmem:[%s24_s0] sm:$0x3] }
   0x2   :  { %v5_v1 = vxor.u32 2147483648, %v2_v0 }
   0x4   :  { %7 = vst [vmem:[%s25_s1] sm:$0x3] %v5_v1 }

// kernel: gen_sp_forward.3
= control target key start
LH: loop header
LB: loop body
LE: loop exit
PB: predicated region body
PF: predicated region fallthrough
CT: control target
= control target key end

     0   :  { %9 = vsyncpa [#allocation3], 0  ;;  %s975_s0 = inlined_call_operand.vmem [shape: f32[2,256], index: 0, kind: input, shape index: {}]   ;;  %s976_s1 = inlined_call_operand.vmem [shape: f32[4,2], index: 1, kind: input, shape index: {}]   ;;  %s977_s2 = inlined_call_operand.vmem [shape: f32[2,5,256], index: 2, kind: input, shape index: {}]   ;;  %s978_s3 = inlined_call_operand.vmem [shape: f32[2,5,4], index: 3, kind: input, shape index: {}]   ;;  %s979_s4 = inlined_call_operand.hbm [shape: f32[2,4,256], index: 4, kind: output, shape index: {}]  }
   0x1   :  { %11 = vsyncpa [#allocation3 + $0x1], 0  ;;  %s828_s15 = smov 0   ;;  %s830_s16 = smov 0  }
   0x2   :  { %s832_s17 = smov 0   ;;  %s834_s18 = smov 0  }
   0x3   :  { %s836_s19 = smov 0   ;;  %s838_s20 = smov 0  }
   0x4 LB: > { %s628_s21 = sadd.s32 4294967295, %s797_s20   ;;  %s629_s22 = sadd.s32 4294967294, %s797_s20   ;;  %s797_s20 = sphi %s838_s20, %s17_s20   ;;  %s793_s19 = sphi %s836_s19, %s986_s19   ;;  %s789_s18 = sphi %s834_s18, %s985_s18   ;;  %s785_s17 = sphi %s832_s17, %s984_s17   ;;  %s781_s16 = sphi %s830_s16, %s983_s16   ;;  %s777_s15 = sphi %s828_s15, %s982_s15  }
   0x5   : > { %s29_s23 = sadd.s32 1, %s793_s19  ;;  %s139_s24 = sadd.s32 1, %s785_s17 }
   0x6   : > { %p31_p0 = scmp.ge.s32.totalorder %s29_s23, 2  ;;  %p149_p1 = scmp.ne.s32.totalorder %s785_s17, %s781_s16 }
   0x7   : > { %p150_p2 = scmp.eq.s32.totalorder %s628_s21, 1  ;;  %p155_p3 = scmp.ne.s32.totalorder %s781_s16, %s777_s15 }
   0x8   : > { %s988_s23 = smov (%p31_p0, %s29_s23), 0  ;;  %p156_p5 = scmp.eq.s32.totalorder %s629_s22, 1 }
   0x9   : > { %p868_p4 = por %p150_p2, %p149_p1  ;;  %s134_s26 = ssub.s32 %s793_s19, %s988_s23 }
   0xa   : > { %p633_p6 = scmp.ge.s32.totalorder %s797_s20, 1  ;;  %p137_p7 = scmp.eq.s32.totalorder %s134_s26, 0 }
   0xb   : > { %p875_p8 = por %p156_p5, %p155_p3  ;;  %p206_p9 = scmp.lt.s32.totalorder %s797_s20, 3 }
   0xc   : > { %s881_s28 = scalar_select %p137_p7, %s785_s17, %s139_s24  }
   0xd   : > { %p207_p10 = pnand %p633_p6, %p206_p9 }
   0xe   : > { %p252_p11 = scmp.lt.s32.totalorder (!%p207_p10), %s789_s18, 1  ;;  %v270_v0 = vld [vmem:[%s975_s0] ss:$2 sm:$0x3] (!%p207_p10)  ;;  %v393_v1 = vlaneseq (!%p207_p10)  ;;  %v799_v2 = vmov (!%p207_p10), 0.0   ;;  %vm309_vm1 = vcmask (!%p207_p10), 1044480  }
   0xf   : > { %210 = sbr.rel (%p207_p10) target bundleno = 450 (0x1c2), region = 36  ;;  %380 = vmatprep.mubr.f32.mxu0 (!%p207_p10), %v799_v2  ;;  %vm477_vm0 = vcmp.ge.f32.partialorder (!%p207_p10), %v270_v0, 0.0  ;;  %v269_v10 = vld [vmem:[%s976_s1] sm:$0xf] (!%p207_p10)  ;;  %v800_v11 = vmov (!%p207_p10), 1   ;;  %v801_v12 = vmov (!%p207_p10), 0  }
  0x10   : > { %v394_v3 = vshrl.u32 (!%p207_p10), %v393_v1, 7  ;;  %v888_v4 = vsel (!%p207_p10), %vm477_vm0, 1.0, %v799_v2  ;;  %709 = vset.pattern.permute.xlu1 (!%p207_p10), %v800_v11  ;;  %vm305_vm2 = vcmask (!%p207_p10), 39936   ;;  %v638_v15 = vld [vmem:[%s975_s0 + $0x1] ss:$2 sm:$0x3] (!%p207_p10) }
  0x11   : > { %410 = vperm.xlu1 (!%p207_p10), %709, %v269_v10   ;;  %vm434_vm8 = vcmask (!%p207_p10), 1043456   ;;  %s242_s26 = sand.u32 (!%p207_p10), 1, %s781_s16   ;;  %s649_s30 = sshll.u32 (!%p207_p10), %s789_s18, 7 }
  0x12   : > { %v890_v5 = vsub.s32 (!%p207_p10), 1, %v394_v3  ;;  %v903_v14 = vsub.s32 (!%p207_p10), 0, %v394_v3  ;;  %s634_s29 = sshll.u32 (!%p207_p10), %s242_s26, 3  ;;  %s928_s9 = scalar_lea.hbm (!%p207_p10), %s979_s4, %s649_s30 }
  0x14   : > { %v488_v8 = vrot.slane (!%p207_p10), %v888_v4, %v890_v5  ;;  %v417_v16 = vrot.slane (!%p207_p10), %v638_v15, %v903_v14  ;;  %v396_v17 = vrot.slane (!%p207_p10), %v270_v0, %v903_v14  ;;  %v421_v18 = vrot.slane (!%p207_p10), %v638_v15, %v890_v5 }
  0x15   : > { %v400_v20 = vrot.slane (!%p207_p10), %v270_v0, %v890_v5 }
  0x16   : > { %s253_s5 = scalar_select %p252_p11, %s789_s18, 1 }
  0x17   : > { %s802_s18 = smov [#allocation2]  }
  0x18   : > { %s637_s6 = sshll.u32 %s253_s5, 3  ;;  %s648_s7 = sshll.u32 %s253_s5, 4 }
  0x19   : > { %s264_s10 = scalar_lea.vmem %s978_s3, %s637_s6  ;;  %s259_s13 = scalar_lea.vmem %s977_s2, %s648_s7 }
  0x1a   : > { %v266_v6 = vld [vmem:[%s264_s10] sm:$0x1f]  ;;  %v268_v7 = vld [vmem:[%s259_s13 + $0x8] sm:$0x1f]  ;;  %s244_s5 = scalar_lea.vmem [#allocation2], %s634_s29  ;;  %s509_s10 = scalar_lea.sflag [#allocation3], %s242_s26 }
  0x1b   : > { %v267_v9 = vld [vmem:[%s259_s13] sm:$0x1f]  ;;  %273 = vxpose.xlu0.b32.start.end [1/1] (short) (narrow) %v266_v6, 8  ;;  %639 = vmatprep.subr.msk.mxu0 %vm309_vm1, %v268_v7  ;;  %s525_s6 = sshll.u32 %s244_s5, 4  ;;  %s723_s12 = sshll.u32 %s802_s18, 4  ;;  %s930_s6 = int_to_ptr.vmem [resolvable:$true] %s525_s6  ;;  %s724_s12 = int_to_ptr.vmem [resolvable:$false] %s723_s12 }
  0x1c   : > { %640 = vmatpush1.msk.msra.mxu0 %vm309_vm1, %v267_v9  ;;  %s719_s11 = scalar_lea.vmem %s930_s6, 128  ;;  %s725_s13 = scalar_lea.vmem %s724_s12, 256 }
  0x1d   : > { %p720_p12 = scmp.ne.s32.totalorder %s930_s6, %s719_s11  ;;  %p726_p1 = scmp.lt.s32.totalorder %s930_s6, %s724_s12 }
  0x1e   : > { %p727_p2 = scmp.lt.s32.totalorder %s725_s13, %s719_s11 }
  0x1f   : > { %p721_p13 = pnand %p720_p12, %p868_p4 }
  0x20   : > { %p728_p3 = por %p727_p2, %p726_p1 }
  0x21   : > { %p722_p0 = pneg %p721_p13 }
  0x23   : > { %p729_p5 = pnand %p728_p3, %p722_p0 }
  0x44   : > { %708 = vset.pattern.permute.xlu0 %v801_v12 }
  0x45   : > { %389 = vperm.xlu0 %708, %v269_v10  }
  0x49   : > { %710 = vset.pattern.permute.xlu0 %v800_v11  ;;  %v484_v11 = vrot.slane %v888_v4, %v903_v14 }
  0x90   : > { %v411_v19 = vpop.permute.xlu1 %410 }
  0x91   : > { %v424_v22 = vsub.f32 %v411_v19, %v417_v16  ;;  %v425_v24 = vsub.f32 %v411_v19, %v421_v18 }
  0x93   : > { %v426_v26 = vand.u32 2147483647, %v424_v22  ;;  %v427_v28 = vand.u32 2147483647, %v425_v24 }
  0x95   : > { %vm428_vm3 = vcmp.le.f32.partialorder %v426_v26, 1.0  ;;  %vm429_vm5 = vcmp.le.f32.partialorder %v427_v28, 1.0 }
  0x9b   : > { %v289_v13 = vpop.trf.xlu0 }
  0x9c   : > { %641 = vmatmul.mubr.msk.f32.vlgmr.msra.gmra.mrb[0].mxu0 %vm305_vm2, %v289_v13 }
  0xc4   : > { %v390_v21 = vpop.permute.xlu0 %389 }
  0xc5   : > { %v403_v23 = vsub.f32 %v390_v21, %v396_v17  ;;  %v404_v25 = vsub.f32 %v390_v21, %v400_v20 }
  0xc7   : > { %v405_v27 = vand.u32 2147483647, %v403_v23  ;;  %v406_v29 = vand.u32 2147483647, %v404_v25 }
  0xc9   : > { %vm407_vm4 = vcmp.le.f32.partialorder %v405_v27, 1.0  ;;  %vm408_vm6 = vcmp.le.f32.partialorder %v406_v29, 1.0 }
  0xca   : > { %vm430_vm7 = vmand %vm407_vm4, %vm428_vm3 }
  0xcb   : > { %vm431_vm9 = vmand %vm408_vm6, %vm429_vm5 }
 0x16f   : > { %v382_v30 = vpop.f32.mrb[0].mxu0 }
 0x170   : > { %v432_v31 = vsel %vm430_vm7, %v382_v30, -1e+30  ;;  %v384_v32 = vpop.f32.mrb[1].mxu0 }
 0x171   : > { %v435_v33 = vsel %vm434_vm8, %v432_v31, -inf  ;;  %v433_v34 = vsel %vm431_vm9, %v384_v32, -1e+30 }
 0x172   : > { %v436_v35 = vrot.slane %v435_v33, 4  ;;  %v442_v36 = vsel %vm434_vm8, %v433_v34, -inf }
 0x173   : > { %v443_v37 = vrot.slane %v442_v36, 4 }
 0x174   : > { %v437_v38 = vmax.f32 %v435_v33, %v436_v35 }
 0x175   : > { %v444_v39 = vmax.f32 %v442_v36, %v443_v37 }
 0x176   : > { %v438_v40 = vrot.slane %v437_v38, 2 }
 0x177   : > { %v445_v41 = vrot.slane %v444_v39, 2 }
 0x178   : > { %v439_v42 = vmax.f32 %v437_v38, %v438_v40 }
 0x179   : > { %v446_v43 = vmax.f32 %v444_v39, %v445_v41 }
 0x17a   : > { %v440_v44 = vrot.slane %v439_v42, 1 }
 0x17b   : > { %v447_v45 = vrot.slane %v446_v43, 1 }
 0x17c   : > { %v441_v46 = vmax.f32 %v439_v42, %v440_v44 }
 0x17d   : > { %v448_v47 = vmax.f32 %v446_v43, %v447_v45 }
 0x17e   : > { %v449_v48 = vsub.f32 %v432_v31, %v441_v46 }
 0x17f   : > { %v450_v49 = vsub.f32 %v433_v34, %v448_v47 }
 0x180   : > { %v451_v50 = vmul.f32 1.442695, %v449_v48 }
 0x181   : > { %v453_v51 = vmul.f32 1.442695, %v450_v49 }
 0x182   : > { %711 = vpow2.f32 %v451_v50 }
 0x183   : > { %713 = vpow2.f32 %v453_v51 }
 0x18c   : > { %v712_v52 = vpop.eup %711 }
 0x18d   : > { %v714_v53 = vpop.eup %713  ;;  %v455_v54 = vsel %vm434_vm8, %v712_v52, 0.0 }
 0x18e   : > { %v456_v55 = vrot.slane %v455_v54, 4  ;;  %v462_v56 = vsel %vm434_vm8, %v714_v53, 0.0 }
 0x18f   : > { %v463_v57 = vrot.slane %v462_v56, 4 }
 0x190   : > { %v457_v58 = vadd.f32 %v456_v55, %v455_v54 }
 0x191   : > { %v464_v59 = vadd.f32 %v463_v57, %v462_v56 }
 0x192   : > { %v458_v60 = vrot.slane %v457_v58, 2 }
 0x193   : > { %v465_v61 = vrot.slane %v464_v59, 2 }
 0x194   : > { %v459_v62 = vadd.f32 %v458_v60, %v457_v58 }
 0x195   : > { %v466_v63 = vadd.f32 %v465_v61, %v464_v59 }
 0x196   : > { %v460_v0 = vrot.slane %v459_v62, 1 }
 0x197   : > { %v467_v1 = vrot.slane %v466_v63, 1 }
 0x198   : > { %v461_v2 = vadd.f32 %v460_v0, %v459_v62 }
 0x199   : > { %v468_v3 = vadd.f32 %v467_v1, %v466_v63 }
 0x19a   : > { %715 = vrcp.f32 %v461_v2 }
 0x19b   : > { %717 = vrcp.f32 %v468_v3 }
 0x1a4   : > { %v716_v6 = vpop.eup %715 }
 0x1a5   : > { %v718_v7 = vpop.eup %717  ;;  %v471_v9 = vmul.f32 %v716_v6, %v461_v2 }
 0x1a6   : > { %v472_v10 = vmul.f32 %v718_v7, %v468_v3 }
 0x1a7   : > { %v473_v12 = vsub.f32 2.0, %v471_v9 }
 0x1a8   : > { %v474_v13 = vsub.f32 2.0, %v472_v10 }
 0x1a9   : > { %v475_v15 = vmul.f32 %v716_v6, %v473_v12 }
 0x1aa   : > { %v476_v16 = vmul.f32 %v718_v7, %v474_v13 }
 0x1ab   : > { %v491_v17 = vmul.f32 %v484_v11, %v475_v15 }
 0x1ac   : > { %v492_v18 = vmul.f32 %v488_v8, %v476_v16 }
 0x1ad   : > { %v496_v19 = vrot.slane %v491_v17, %v903_v14 }
 0x1ae   : > { %v500_v20 = vrot.slane %v492_v18, %v903_v14 }
 0x1af   : > { %v501_v21 = vmul.f32 %v712_v52, %v496_v19 }
 0x1b0   : > { %v502_v22 = vmul.f32 %v714_v53, %v500_v20 }
 0x1b2   : > { %v505_v23 = vcombine.low %v501_v21, %v502_v22 }
 0x1b4   : > { %507 = vst [vmem:[%s244_s5] sm:$0xff] %v505_v23 }
 0x1b5   : > { %732 = shalt.err (!%p729_p5)
}
 0x1b6   : > { %s733_s14 = scalar_lea.hbm %s928_s9, 128  ;;  %s737_s24 = scalar_lea.hbm %s979_s4, 256 }
 0x1b7   : > { %p734_p6 = scmp.ne.s32.totalorder %s928_s9, %s733_s14  ;;  %p738_p10 = scmp.lt.u32.totalorder %s928_s9, %s979_s4 }
 0x1b8   : > { %p739_p11 = scmp.lt.u32.totalorder %s737_s24, %s733_s14  ;;  %p741_p13 = scmp.lt.u32.totalorder %s733_s14, %s928_s9 }
 0x1b9   : > { %p735_p7 = pnand %p734_p6, %p868_p4 }
 0x1ba   : > { %p740_p12 = por %p739_p11, %p738_p10 }
 0x1bb   : > { %p736_p9 = pneg %p735_p7 }
 0x1bc   : > { %p742_p0 = por %p741_p13, %p740_p12 }
 0x1be   : > { %p743_p1 = pnand %p742_p0, %p736_p9 }
 0x1c0   : > { %746 = shalt.err (!%p743_p1)
}
 0x1c1   : > { %650 = dma.vmem_to_hbm [thread:$0]  (%p868_p4), %s930_s6, 128, %s928_s9, %s509_s10  }
 0x1c2 PF: > { %p656_p2 = scmp.ge.s32.totalorder %s797_s20, 2  ;;  %s537_s30 = sand.u32 1, %s777_s15  }
 0x1c3   : > { %s538_s5 = scalar_lea.sflag [#allocation3], %s537_s30 }
 0x1c4   : > { %p653_p3 = pnand %p656_p2, %p875_p8 }
 0x1c6   : > { %772 = dma.done.wait (!%p653_p3), %s538_s5, 128  }
 0x1c7   : > { %774 = vsyncadd (!%p653_p3), %s538_s5, 4294967168  ;;  %s17_s20 = sadd.s32 1, %s797_s20   ;;  %s982_s15 = smov %s781_s16 }
 0x1c8   : > { %p14_p5 = scmp.ge.s32.totalorder %s17_s20, 4   ;;  %s983_s16 = smov %s785_s17 }
 0x1c9   : > { %s984_s17 = smov %s881_s28  ;;  %s985_s18 = smov %s793_s19 }
 0x1ca   : > { %s986_s19 = smov %s988_s23  ;;  %16 = sbr.rel (!%p14_p5) target bundleno = 4 (0x4), region = 78 }
 0x1d1   :  { %543 = vsyncpa [#allocation3], 1 }
 0x1d2   :  { %545 = vsyncpa [#allocation3 + $0x1], 1 }

// kernel: gen_sp_forward.2
= control target key start
LH: loop header
LB: loop body
LE: loop exit
PB: predicated region body
PF: predicated region fallthrough
CT: control target
= control target key end

     0   :  { %s854_s15 = smov 0   ;;  %s856_s16 = smov 0   ;;  %s923_s0 = inlined_call_operand.vmem [shape: f32[2,256], index: 0, kind: input, shape index: {}]   ;;  %s924_s1 = inlined_call_operand.vmem [shape: f32[2,5,256], index: 1, kind: input, shape index: {}]   ;;  %s925_s2 = inlined_call_operand.vmem [shape: f32[2,2,5,4], index: 2, kind: input, shape index: {}]   ;;  %s926_s3 = inlined_call_operand.vmem [shape: f32[2,4,2], index: 3, kind: input, shape index: {}]   ;;  %s927_s4 = inlined_call_operand.vmem [shape: f32[2,2,5,4], index: 4, kind: output, shape index: {}]  }
   0x1   :  { %s858_s17 = smov 0   ;;  %s860_s18 = smov 0  }
   0x2   :  { %s862_s19 = smov 0  }
   0x3 LB: > { %s29_s20 = sadd.s32 1, %s815_s17  ;;  %s33_s21 = sadd.s32 1, %s819_s18  ;;  %s823_s19 = sphi %s862_s19, %s14_s19   ;;  %s819_s18 = sphi %s860_s18, %s931_s18   ;;  %s815_s17 = sphi %s858_s17, %s930_s17   ;;  %s811_s16 = sphi %s856_s16, %s929_s16   ;;  %s807_s15 = sphi %s854_s15, %s928_s15  }
   0x4   : > { %p31_p0 = scmp.ge.s32.totalorder %s29_s20, 2  ;;  %p705_p1 = scmp.ge.s32.totalorder %s823_s19, 1 }
   0x5   : > { %p229_p2 = scmp.lt.s32.totalorder %s823_s19, 5 }
   0x6   : > { %s933_s20 = smov (%p31_p0, %s29_s20), 0  ;;  %s935_s21 = smov (!%p31_p0, %s33_s21), %s819_s18 }
   0x7   : > { %p230_p3 = pnand %p705_p1, %p229_p2  ;;  %p35_p4 = scmp.ge.s32.totalorder %s935_s21, 2 }
   0x8   : > { %p280_p5 = scmp.lt.s32.totalorder (!%p230_p3), %s807_s15, 1  ;;  %p286_p6 = scmp.lt.s32.totalorder (!%p230_p3), %s811_s16, 1  ;;  %v825_v0 = vmov (!%p230_p3), 0.0   ;;  %vm826_vm0 = vmmov (!%p230_p3), 0   ;;  %vm356_vm1 = vcmask (!%p230_p3), 1044480   ;;  %v827_v3 = vmov (!%p230_p3), 1  }
   0x9   : > { %s937_s21 = smov (%p35_p4, %s935_s21), 0  ;;  %233 = sbr.rel (%p230_p3) target bundleno = 644 (0x284), region = 36 }
   0xa   : > { %724 = vmatprep.subr.mxu0 (!%p230_p3), %v825_v0  ;;  %726 = vmatprep.mubr.msk.f32.mxu0 (!%p230_p3), %vm826_vm0, %v825_v0  ;;  %v828_v5 = vmov (!%p230_p3), 0   ;;  %vm352_vm3 = vcmask (!%p230_p3), 39936   ;;  %v435_v9 = vlaneseq (!%p230_p3)  ;;  %vm455_vm7 = vcmask (!%p230_p3), 1043456  }
   0xb   : > { %729 = vmatprep.subr.mxu1 (!%p230_p3), %v825_v0  ;;  %731 = vmatprep.mubr.msk.f32.mxu1 (!%p230_p3), %vm826_vm0, %v825_v0  ;;  %vm560_vm8 = vcmask (!%p230_p3), 28672  }
   0xc   : > { %779 = vset.pattern.permute.xlu1 (!%p230_p3), %v827_v3  ;;  %v436_v10 = vshrl.u32 (!%p230_p3), %v435_v9, 7 }
   0xe   : > { %v437_v11 = vsub.s32 (!%p230_p3), 0, %v436_v10 }
  0x10   : > { %s939_s15 = smov (!%p280_p5, %s807_s15), 1  ;;  %s941_s16 = smov (!%p286_p6, %s811_s16), 1 }
  0x11   : > { %s707_s22 = sshll.u32 %s941_s16, 1  ;;  %s711_s5 = sshll.u32 %s939_s15, 2 }
  0x12   : > { %s291_s23 = sadd.s32 %s707_s22, %s939_s15  ;;  %s306_s8 = scalar_lea.vmem %s926_s3, %s711_s5 }
  0x13   : > { %s884_s24 = sshll.u32 %s291_s23, 3  ;;  %v317_v4 = vld [vmem:[%s306_s8] sm:$0xf]  ;;  %s706_s9 = sshll.u32 %s939_s15, 1 }
  0x14   : > { %s302_s27 = scalar_lea.vmem %s925_s2, %s884_s24  ;;  %s293_s30 = scalar_lea.vmem %s924_s1, %s884_s24  ;;  %443 = vperm.xlu1 %779, %v317_v4  }
  0x15   : > { %v316_v1 = vld [vmem:[%s302_s27] sm:$0x1f]  ;;  %s283_s12 = scalar_lea.vmem %s923_s0, %s706_s9  ;;  %s314_s15 = scalar_lea.vmem %s927_s4, %s884_s24 }
  0x16   : > { %v894_v2 = vld [vmem:[%s293_s30] sm:$0x1f]  ;;  %320 = vxpose.xlu0.b32.start.end [1/1] (short) (narrow) %v316_v1, 8 }
  0x17   : > { %725 = vmatpush3.msk.msra.mxu0 %vm356_vm1, %v894_v2  ;;  %v318_v6 = vld [vmem:[%s283_s12] sm:$0x1]  ;;  %v716_v14 = vld [vmem:[%s283_s12 + $0x1] ss:$0 sm:$0xff] }
  0x18   : > { %vm477_vm2 = vcmp.ge.f32.partialorder %v318_v6, 0.0  ;;  %v438_v12 = vrot.slane %v318_v6, %v437_v11 }
  0x19   : > { %v717_v7 = vsel %vm477_vm2, 1.0, %v825_v0 }
  0x3f   : > { %778 = vset.pattern.permute.xlu0 %v828_v5 }
  0x40   : > { %432 = vperm.xlu0 %778, %v317_v4  }
  0x44   : > { %780 = vset.pattern.permute.xlu0 %v827_v3 }
  0x93   : > { %v444_v13 = vpop.permute.xlu1 %443 }
  0x94   : > { %v450_v16 = vsub.f32 %v444_v13, %v716_v14 }
  0x96   : > { %v336_v8 = vpop.trf.xlu0  ;;  %v451_v18 = vand.u32 2147483647, %v450_v16 }
  0x97   : > { %727 = vmatmul.mubr.msk.f32.vlgmr.msra.gmra.mrb[0].mxu0 %vm352_vm3, %v336_v8 }
  0x98   : > { %vm452_vm4 = vcmp.le.f32.partialorder %v451_v18, 1.0 }
  0xbf   : > { %v433_v15 = vpop.permute.xlu0 %432 }
  0xc0   : > { %v439_v17 = vsub.f32 %v433_v15, %v438_v12 }
  0xc2   : > { %v440_v19 = vand.u32 2147483647, %v439_v17 }
  0xc4   : > { %vm441_vm5 = vcmp.le.f32.partialorder %v440_v19, 1.0 }
  0xc5   : > { %vm453_vm6 = vmand %vm441_vm5, %vm452_vm4 }
 0x16a   : > { %v426_v20 = vpop.f32.mrb[0].mxu0 }
 0x16b   : > { %v454_v21 = vsel %vm453_vm6, %v426_v20, -1e+30  ;;  %v728_v22 = vpop.f32.mrb[1].mxu0 }
 0x16c   : > { %v456_v23 = vsel %vm455_vm7, %v454_v21, -inf }
 0x16d   : > { %v457_v24 = vrot.slane %v456_v23, 4 }
 0x16f   : > { %v458_v25 = vmax.f32 %v456_v23, %v457_v24 }
 0x171   : > { %v459_v26 = vrot.slane %v458_v25, 2 }
 0x173   : > { %v460_v27 = vmax.f32 %v458_v25, %v459_v26 }
 0x175   : > { %v461_v28 = vrot.slane %v460_v27, 1 }
 0x177   : > { %v462_v29 = vmax.f32 %v460_v27, %v461_v28 }
 0x179   : > { %v463_v30 = vsub.f32 %v454_v21, %v462_v29 }
 0x17b   : > { %v464_v31 = vmul.f32 1.442695, %v463_v30 }
 0x17d   : > { %781 = vpow2.f32 %v464_v31 }
 0x187   : > { %v782_v32 = vpop.eup %781 }
 0x188   : > { %v466_v33 = vsel %vm455_vm7, %v782_v32, 0.0 }
 0x189   : > { %v467_v34 = vrot.slane %v466_v33, 4 }
 0x18b   : > { %v468_v35 = vadd.f32 %v467_v34, %v466_v33 }
 0x18d   : > { %v469_v36 = vrot.slane %v468_v35, 2 }
 0x18f   : > { %v470_v37 = vadd.f32 %v469_v36, %v468_v35 }
 0x191   : > { %v471_v38 = vrot.slane %v470_v37, 1 }
 0x193   : > { %v472_v39 = vadd.f32 %v471_v38, %v470_v37 }
 0x195   : > { %783 = vrcp.f32 %v472_v39 }
 0x19f   : > { %v784_v40 = vpop.eup %783 }
 0x1a0   : > { %v474_v41 = vmul.f32 %v784_v40, %v472_v39 }
 0x1a2   : > { %v475_v42 = vsub.f32 2.0, %v474_v41 }
 0x1a4   : > { %v476_v43 = vmul.f32 %v784_v40, %v475_v42 }
 0x1a6   : > { %v480_v44 = vmul.f32 %v717_v7, %v476_v43 }
 0x1a8   : > { %v484_v45 = vrot.slane %v480_v44, %v437_v11 }
 0x1aa   : > { %v485_v46 = vmul.f32 %v782_v32, %v484_v45 }
 0x1ac   : > { %730 = vmatpush3.xpose.msra.mxu1 %v485_v46 }
 0x1af   : > { %732 = vmatmul.mubr.f32.vlgmr.msra.gmra.mrb[0].mxu1 %v894_v2 }
 0x282   : > { %v552_v47 = vpop.f32.mrb[0].mxu1 }
 0x283   : > { %561 = vst.msk [vmem:[%s314_s15] sm:$0x1f] %vm560_vm8, %v552_v47  ;;  %v733_v48 = vpop.f32.mrb[1].mxu1 }
 0x284 PF: > { %s14_s19 = sadd.s32 1, %s823_s19   ;;  %s928_s15 = smov %s815_s17 }
 0x285   : > { %p11_p7 = scmp.ge.s32.totalorder %s14_s19, 6   ;;  %s929_s16 = smov %s819_s18 }
 0x286   : > { %s930_s17 = smov %s933_s20  ;;  %s931_s18 = smov %s937_s21 }
 0x287   :  { %13 = sbr.rel (!%p11_p7) target bundleno = 3 (0x3), region = 83 }

</bundles_post_ra>
